<compile_context>
chip_gen: v5e
topology: v5e:2x2
jax: 0.10.0
libtpu: 0.0.40
codegen_flags: <defaults>
</compile_context>

<pallas_src>
import functools

import jax
import jax.numpy as jnp
from jax.experimental import pallas as pl
from jax.experimental.pallas import tpu as pltpu


def _round_up(v, m):
    return (v + m - 1) // m * m


def _vmem_capacity_bytes():
    """Physical VMEM capacity; conservative (v7x-like) fallback if unknown."""
    try:
        return int(pltpu.get_tpu_info().vmem_capacity_bytes)
    except Exception:
        return 64 << 20


def _choose_tile_rows(rows, features, dtype_bytes, block_budget, two_cores):
    """Largest sublane-aligned row tile whose live VMEM fits `block_budget`.

    Per tile row we account for:
      * double-buffered input block   : 2 * F * dtype_bytes
      * double-buffered output block  : 2 * F * dtype_bytes
      * f32 working set in the kernel : ~3 * F * 4  (x_f32, x-mean, out_f32)
    """
    per_row = 4 * features * dtype_bytes + 3 * features * 4
    t = max(8, block_budget // per_row)
    t = min(t, 2048)                               # diminishing returns past ~2k rows

    # Keep enough grid steps: 2-TC (v7x) wants >=8 steps for balanced megacore
    # sharding; 1-TC chips only need a few steps for pipeline ramp.
    min_steps = 8 if two_cores else 4
    if rows >= min_steps * 8:
        t = min(t, _round_up(pl.cdiv(rows, min_steps), 8))

    t = min(t, _round_up(rows, 8))                 # don't exceed the row count
    t = max(8, (int(t) // 8) * 8)

    if two_cores:
        # Prefer an even grid-step count so the "parallel" row axis splits
        # evenly across the 2 TensorCores; shrink the tile a little if needed.
        steps = pl.cdiv(rows, t)
        while steps > 1 and steps % 2 == 1 and t > 8:
            t -= 8
            steps = pl.cdiv(rows, t)
    return t


def _layernorm_kernel(x_ref, a_ref, b_ref, o_ref, *, eps, n):
    """One (tile_rows, F) slab; normalization over the lane (feature) axis.

    Two-pass statistics (mean, then centered sum of squares) for numerical
    robustness; x is VMEM-resident so the second pass costs ~nothing in this
    HBM-bound kernel.
      mean = sum(x) / n
      var  = sum((x - mean)^2) / (n - 1)      (unbiased, matching torch.std)
    eps is added to std (not var), matching the PyTorch module.

    NOTE: rows of the (masked) partial last block compute stats on stale VMEM
    contents; this is benign because the per-row reduction never mixes rows
    and the out-of-bounds rows are never written back.
    """
    x = x_ref[...].astype(jnp.float32)

    mean = jnp.sum(x, axis=-1, keepdims=True) * (1.0 / n)
    xc = x - mean
    var = jnp.sum(xc * xc, axis=-1, keepdims=True) * (1.0 / (n - 1))
    std = jnp.sqrt(var)
    inv = pl.reciprocal(std + eps, approx=False)   # EUP slot, exact

    a = a_ref[...]                                 # already float32 (pre-cast)
    b = b_ref[...]

    out = xc * (a * inv) + b
    o_ref[...] = out.astype(o_ref.dtype)


def layer_norm(x, a_2, b_2, eps=1e-6, *, tile_rows=None):
    """LayerNorm over the last axis of x (any leading shape)."""
    features = x.shape[-1]
    lead_shape = x.shape[:-1]
    rows = 1
    for d in lead_shape:
        rows *= d

    x2d = x.reshape(rows, features)
    # Pre-cast parameters once (they are fetched once via a constant index_map).
    a2d = a_2.reshape(1, features).astype(jnp.float32)
    b2d = b_2.reshape(1, features).astype(jnp.float32)

    # Generation-aware VMEM budgeting.
    capacity = _vmem_capacity_bytes()
    big_vmem = capacity >= (96 << 20)          # v5e/v6e: 128 MiB; v7x: 64 MiB
    block_budget = (32 << 20) if big_vmem else (16 << 20)
    vmem_limit = (64 << 20) if big_vmem else (48 << 20)
    two_cores = not big_vmem                   # v7x heuristic: 2 TCs / chip

    dtype_bytes = jnp.dtype(x.dtype).itemsize
    if tile_rows is None:
        tile_rows = _choose_tile_rows(rows, features, dtype_bytes,
                                      block_budget, two_cores)

    # No padding anywhere: the block's last dim is the FULL feature extent
    # (legal even when features % 128 != 0), the row grid uses pl.cdiv with
    # Pallas masking the partial last block, and the output is written at its
    # natural (rows, features) shape.
    grid = (pl.cdiv(rows, tile_rows),)

    kernel = functools.partial(_layernorm_kernel, eps=eps, n=features)

    out2d = pl.pallas_call(
        kernel,
        out_shape=jax.ShapeDtypeStruct((rows, features), x.dtype),
        grid_spec=pltpu.PrefetchScalarGridSpec(
            num_scalar_prefetch=0,
            grid=grid,
            in_specs=[
                pl.BlockSpec((tile_rows, features), lambda i: (i, 0)),
                pl.BlockSpec((1, features), lambda i: (0, 0)),
                pl.BlockSpec((1, features), lambda i: (0, 0)),
            ],
            out_specs=pl.BlockSpec((tile_rows, features), lambda i: (i, 0)),
        ),
        compiler_params=pltpu.CompilerParams(
            dimension_semantics=("parallel",),
            vmem_limit_bytes=int(vmem_limit),
        ),
    )(x2d, a2d, b2d)

    return out2d.reshape(*lead_shape, features)


if __name__ == "__main__":
    key = jax.random.PRNGKey(0)
    batch, seq, features = 2, 8, 32

    x = jax.random.normal(key, (batch, seq, features), dtype=jnp.float32)
    # Deterministic parameter init, matching nn.Parameter(torch.ones/zeros).
    a_2 = jnp.ones((features,), dtype=jnp.float32)
    b_2 = jnp.zeros((features,), dtype=jnp.float32)
    eps = 1e-6

    out = layer_norm(x, a_2, b_2, eps)
    out = jax.block_until_ready(out)

    # Pure-JAX reference (unbiased std, matching torch.std).
    mean = jnp.mean(x, axis=-1, keepdims=True)
    std = jnp.sqrt(
        jnp.sum((x - mean) ** 2, axis=-1, keepdims=True) / (features - 1))
    ref = a_2 * (x - mean) / (std + eps) + b_2

    assert out.shape == x.shape
    assert jnp.allclose(out, ref, atol=1e-5, rtol=1e-5), "mismatch vs reference"
    print("KERNEL_OK")
</pallas_src>

<mosaic_0001>
module attributes {stable_mosaic.version = 11 : i64} {
  func.func @_layernorm_kernel(%arg0: i32, %arg1: memref<16x32xf32, #tpu.memory_space<vmem>>, %arg2: memref<1x32xf32, #tpu.memory_space<vmem>>, %arg3: memref<1x32xf32, #tpu.memory_space<vmem>>, %arg4: memref<16x32xf32, #tpu.memory_space<vmem>>) attributes {dimension_semantics = [#tpu.dimension_semantics<parallel>], iteration_bounds = array<i64: 1>, scalar_prefetch = 0 : i64, scratch_operands = 0 : i64, tpu.core_type = #tpu.core_type<tc>, window_params = [{transform_indices = @transform_0, window_bounds = array<i64: 16, 32>}, {pipeline_mode = #tpu.pipeline_mode<synchronous>, transform_indices = @transform_1, window_bounds = array<i64: 1, 32>}, {pipeline_mode = #tpu.pipeline_mode<synchronous>, transform_indices = @transform_2, window_bounds = array<i64: 1, 32>}, {transform_indices = @transform_3, window_bounds = array<i64: 16, 32>}]} {
    %c0 = arith.constant 0 : index
    %c0_0 = arith.constant 0 : index
    %0 = vector.load %arg1[%c0, %c0_0] : memref<16x32xf32, #tpu.memory_space<vmem>>, vector<16x32xf32>
    %cst = arith.constant dense<0.000000e+00> : vector<16xf32>
    %1 = vector.multi_reduction <add>, %0, %cst [1] : vector<16x32xf32> to vector<16xf32>
    %2 = vector.shape_cast %1 : vector<16xf32> to vector<16x1xf32>
    %cst_1 = arith.constant 3.125000e-02 : f32
    %3 = vector.broadcast %cst_1 : f32 to vector<16x1xf32>
    %4 = arith.mulf %2, %3 : vector<16x1xf32>
    %5 = vector.broadcast %4 : vector<16x1xf32> to vector<16x32xf32>
    %6 = arith.subf %0, %5 : vector<16x32xf32>
    %7 = arith.mulf %6, %6 : vector<16x32xf32>
    %cst_2 = arith.constant dense<0.000000e+00> : vector<16xf32>
    %8 = vector.multi_reduction <add>, %7, %cst_2 [1] : vector<16x32xf32> to vector<16xf32>
    %9 = vector.shape_cast %8 : vector<16xf32> to vector<16x1xf32>
    %cst_3 = arith.constant 0.0322580636 : f32
    %10 = vector.broadcast %cst_3 : f32 to vector<16x1xf32>
    %11 = arith.mulf %9, %10 : vector<16x1xf32>
    %12 = math.sqrt %11 : vector<16x1xf32>
    %cst_4 = arith.constant 9.99999997E-7 : f32
    %13 = vector.broadcast %cst_4 : f32 to vector<16x1xf32>
    %14 = arith.addf %12, %13 : vector<16x1xf32>
    %15 = tpu.reciprocal %14 : vector<16x1xf32> -> vector<16x1xf32>
    %c0_5 = arith.constant 0 : index
    %c0_6 = arith.constant 0 : index
    %16 = vector.load %arg2[%c0_5, %c0_6] : memref<1x32xf32, #tpu.memory_space<vmem>>, vector<1x32xf32>
    %c0_7 = arith.constant 0 : index
    %c0_8 = arith.constant 0 : index
    %17 = vector.load %arg3[%c0_7, %c0_8] : memref<1x32xf32, #tpu.memory_space<vmem>>, vector<1x32xf32>
    %18 = vector.broadcast %16 : vector<1x32xf32> to vector<16x32xf32>
    %19 = vector.broadcast %15 : vector<16x1xf32> to vector<16x32xf32>
    %20 = arith.mulf %18, %19 : vector<16x32xf32>
    %21 = arith.mulf %6, %20 : vector<16x32xf32>
    %22 = vector.broadcast %17 : vector<1x32xf32> to vector<16x32xf32>
    %23 = arith.addf %21, %22 : vector<16x32xf32>
    %c0_9 = arith.constant 0 : index
    %c0_10 = arith.constant 0 : index
    %24 = vector.load %arg4[%c0_9, %c0_10] : memref<16x32xf32, #tpu.memory_space<vmem>>, vector<16x32xf32>
    tpu.vector_store %arg4[%c0_9, %c0_10], %23 {strides = array<i32>} : memref<16x32xf32, #tpu.memory_space<vmem>>, vector<16x32xf32>,
    return
  }
  func.func @transform_0(%arg0: i32) -> (i32, i32) {
    %c0_i32 = arith.constant 0 : i32
    %c0_i32_0 = arith.constant 0 : i32
    return %arg0, %c0_i32 : i32, i32
  }
  func.func @transform_1(%arg0: i32) -> (i32, i32) {
    %c0_i32 = arith.constant 0 : i32
    %c0_i32_0 = arith.constant 0 : i32
    %c0_i32_1 = arith.constant 0 : i32
    return %c0_i32, %c0_i32_0 : i32, i32
  }
  func.func @transform_2(%arg0: i32) -> (i32, i32) {
    %c0_i32 = arith.constant 0 : i32
    %c0_i32_0 = arith.constant 0 : i32
    %c0_i32_1 = arith.constant 0 : i32
    return %c0_i32, %c0_i32_0 : i32, i32
  }
  func.func @transform_3(%arg0: i32) -> (i32, i32) {
    %c0_i32 = arith.constant 0 : i32
    %c0_i32_0 = arith.constant 0 : i32
    return %arg0, %c0_i32 : i32, i32
  }
}

</mosaic_0001>

<bundles_post_ra>
// kernel: tpu_custom_call.1
= control target key start
LH: loop header
LB: loop body
LE: loop exit
PB: predicated region body
PF: predicated region fallthrough
CT: control target
= control target key end

     0   :  { %8 = vsyncpa [#allocation3], 0  ;;  %s310_s0 = inlined_call_operand.hbm [shape: f32[16,32], index: 0, kind: input, shape index: {}]   ;;  %s311_s1 = inlined_call_operand.hbm [shape: f32[1,32], index: 1, kind: input, shape index: {}]   ;;  %s312_s2 = inlined_call_operand.vmem [shape: f32[1,32], index: 2, kind: input, shape index: {}]   ;;  %s313_s3 = inlined_call_operand.hbm [shape: f32[16,32], index: 3, kind: output, shape index: {}]  }
   0x1   :  { %9 = vsyncpa [#allocation6], 0 }
   0x2   :  { %10 = vsyncpa [#allocation4], 0  ;;  %s15_s14 = sshll.u32 %s310_s0, 4  ;;  %s251_s15 = smov [#allocation2]   ;;  %s16_s14 = int_to_ptr.hbm [resolvable:$true] %s15_s14 }
   0x3   :  { %s17_s16 = sshll.u32 %s251_s15, 4  ;;  %s29_s19 = sshll.u32 %s311_s1, 4  ;;  %s18_s16 = int_to_ptr.vmem [resolvable:$true] %s17_s16  ;;  %s30_s19 = int_to_ptr.hbm [resolvable:$true] %s29_s19 }
   0x4   :  { %s252_s20 = smov 128   ;;  %s253_s21 = smov 8  }
   0x5   :  { %23 = dma.hbm_to_vmem [thread:$0]  %s16_s14, 256, %s18_s16, [#allocation3], %s252_s20, %s252_s20, %s253_s21  }
   0x6   :  { %s254_s22 = smov [#allocation5]  }
   0x7   :  { %s31_s23 = sshll.u32 %s254_s22, 4  ;;  %s32_s23 = int_to_ptr.vmem [resolvable:$true] %s31_s23 }
   0x8   :  { %34 = dma.hbm_to_vmem [thread:$0]  %s30_s19, 16, %s32_s23, [#allocation6]  }
   0x9   :  { %245 = dma.done.wait [#allocation3], 256  }
   0xa   :  { %246 = vsyncadd [#allocation3], 4294967040 }
   0xb   :  { %247 = dma.done.wait [#allocation6], 16  }
   0xc   :  { %248 = vsyncadd [#allocation6], 4294967280  ;;  %vm47_vm0 = vcmask 261120   ;;  %v45_v0 = vld [vmem:[#allocation2] sm:$0xff]  ;;  %v46_v2 = vld [vmem:[#allocation2 + $0x8] sm:$0xff]  ;;  %s255_s24 = smov [#allocation7]  }
   0xd   :  { %v48_v1 = vsel %vm47_vm0, %v45_v0, 0.0  ;;  %v51_v3 = vsel %vm47_vm0, %v46_v2, 0.0  ;;  %v163_v47 = vld [vmem:[#allocation5] ss:$0 sm:$0xff]  ;;  %v164_v55 = vld [vmem:[%s312_s2] ss:$0 sm:$0xff] }
   0xe   :  { %49 = vadd.xlane.f32.xlu0 %v48_v1  ;;  %s142_s25 = sshll.u32 %s255_s24, 4  ;;  %s144_s27 = sshll.u32 %s313_s3, 4  ;;  %s143_s25 = int_to_ptr.vmem [resolvable:$true] %s142_s25  ;;  %s145_s27 = int_to_ptr.hbm [resolvable:$true] %s144_s27 }
  0x16   :  { %52 = vadd.xlane.f32.xlu0 %v51_v3 }
  0x81   :  { %v50_v4 = vpop.xlane.xlu0 %49 }
  0x82   :  { %v54_v5 = vmul.f32 0.03125, %v50_v4 }
  0x84   :  { %v287_v6 = vsub.f32 %v45_v0, %v54_v5 }
  0x86   :  { %v58_v7 = vmul.f32 %v287_v6, %v287_v6 }
  0x88   :  { %v60_v8 = vsel %vm47_vm0, %v58_v7, 0.0 }
  0x89   :  { %61 = vadd.xlane.f32.xlu1 %v60_v8  ;;  %v53_v9 = vpop.xlane.xlu0 %52 }
  0x8a   :  { %v55_v10 = vmul.f32 0.03125, %v53_v9 }
  0x8c   :  { %v292_v11 = vsub.f32 %v46_v2, %v55_v10 }
  0x8e   :  { %v59_v12 = vmul.f32 %v292_v11, %v292_v11 }
  0x90   :  { %v63_v13 = vsel %vm47_vm0, %v59_v12, 0.0 }
  0x91   :  { %64 = vadd.xlane.f32.xlu1 %v63_v13 }
  0xfc   :  { %v62_v14 = vpop.xlane.xlu1 %61 }
  0xfd   :  { %v66_v15 = vmul.f32 0.032258064, %v62_v14 }
  0xff   :  { %165 = vrsqrt.f32 %v66_v15  ;;  %vm75_vm1 = vcmp.eq.f32.partialorder %v66_v15, inf  ;;  %v78_v28 = vand.u32 2147483648, %v66_v15  ;;  %vm77_vm2 = vcmp.eq.f32.partialorder %v66_v15, 0.0 }
 0x104   :  { %v65_v16 = vpop.xlane.xlu1 %64 }
 0x105   :  { %v166_v17 = vpop.eup %165  ;;  %v67_v18 = vmul.f32 0.032258064, %v65_v16 }
 0x106   :  { %v69_v19 = vmul.f32 %v166_v17, %v66_v15 }
 0x107   :  { %167 = vrsqrt.f32 %v67_v18  ;;  %vm87_vm3 = vcmp.eq.f32.partialorder %v67_v18, inf  ;;  %v90_v36 = vand.u32 2147483648, %v67_v18  ;;  %vm89_vm4 = vcmp.eq.f32.partialorder %v67_v18, 0.0 }
 0x108   :  { %v70_v20 = vmul.f32 %v166_v17, %v69_v19 }
 0x10a   :  { %v71_v21 = vmul.f32 0.5, %v70_v20 }
 0x10c   :  { %v72_v22 = vsub.f32 1.5, %v71_v21 }
 0x10d   :  { %v168_v23 = vpop.eup %167 }
 0x10e   :  { %v73_v24 = vmul.f32 %v166_v17, %v72_v22  ;;  %v81_v25 = vmul.f32 %v168_v23, %v67_v18 }
 0x110   :  { %v74_v26 = vmul.f32 %v73_v24, %v66_v15  ;;  %v82_v27 = vmul.f32 %v168_v23, %v81_v25 }
 0x112   :  { %v76_v29 = vsel %vm75_vm1, %v66_v15, %v74_v26  ;;  %v83_v30 = vmul.f32 0.5, %v82_v27 }
 0x113   :  { %v79_v31 = vsel %vm77_vm2, %v78_v28, %v76_v29 }
 0x114   :  { %v92_v32 = vadd.f32 1e-06, %v79_v31  ;;  %v84_v33 = vsub.f32 1.5, %v83_v30 }
 0x116   :  { %169 = vrcp.f32 %v92_v32  ;;  %v85_v34 = vmul.f32 %v168_v23, %v84_v33  ;;  %v105_v43 = vand.u32 2147483648, %v92_v32  ;;  %v103_v45 = vand.u32 2147483647, %v92_v32 }
 0x117   :  { %vm99_vm6 = vweird.f32 %v92_v32 }
 0x118   :  { %v86_v35 = vmul.f32 %v85_v34, %v67_v18  ;;  %v106_v49 = vor.u32 1.1754944e-38, %v105_v43  ;;  %vm104_vm8 = vcmp.eq.f32.partialorder %v103_v45, 8.507059e+37 }
 0x11a   :  { %v88_v37 = vsel %vm87_vm3, %v67_v18, %v86_v35 }
 0x11b   :  { %v91_v38 = vsel %vm89_vm4, %v90_v36, %v88_v37 }
 0x11c   :  { %v170_v39 = vpop.eup %169  ;;  %v93_v40 = vadd.f32 1e-06, %v91_v38 }
 0x11d   :  { %v95_v41 = vmul.f32 %v170_v39, %v92_v32  ;;  %vm100_vm5 = vweird.f32 %v170_v39 }
 0x11e   :  { %171 = vrcp.f32 %v93_v40  ;;  %vm101_vm7 = vmor %vm99_vm6, %vm100_vm5  ;;  %v119_v56 = vand.u32 2147483648, %v93_v40  ;;  %v117_v58 = vand.u32 2147483647, %v93_v40  ;;  %vm113_vm10 = vweird.f32 %v93_v40 }
 0x11f   :  { %v96_v42 = vsub.f32 1.0, %v95_v41 }
 0x120   :  { %v120_v62 = vor.u32 1.1754944e-38, %v119_v56  ;;  %vm118_vm12 = vcmp.eq.f32.partialorder %v117_v58, 8.507059e+37 }
 0x121   :  { %v97_v44 = vmul.f32 %v170_v39, %v96_v42 }
 0x123   :  { %v98_v46 = vadd.f32 %v170_v39, %v97_v44 }
 0x124   :  { %v172_v48 = vpop.eup %171 }
 0x125   :  { %v102_v50 = vsel %vm101_vm7, %v170_v39, %v98_v46  ;;  %v109_v51 = vmul.f32 %v172_v48, %v93_v40  ;;  %vm114_vm9 = vweird.f32 %v172_v48 }
 0x126   :  { %v107_v52 = vsel %vm104_vm8, %v106_v49, %v102_v50  ;;  %vm115_vm11 = vmor %vm113_vm10, %vm114_vm9 }
 0x127   :  { %v110_v53 = vsub.f32 1.0, %v109_v51  ;;  %v127_v54 = vmul.f32 %v163_v47, %v107_v52 }
 0x129   :  { %v111_v57 = vmul.f32 %v172_v48, %v110_v53  ;;  %v129_v59 = vmul.f32 %v127_v54, %v287_v6 }
 0x12b   :  { %v112_v60 = vadd.f32 %v172_v48, %v111_v57  ;;  %v134_v61 = vadd.f32 %v164_v55, %v129_v59 }
 0x12d   :  { %v116_v63 = vsel %vm115_vm11, %v172_v48, %v112_v60  ;;  %136 = vst.msk [vmem:[#allocation7] sm:$0xff] %vm47_vm0, %v134_v61 }
 0x12e   :  { %v121_v0 = vsel %vm118_vm12, %v120_v62, %v116_v63 }
 0x12f   :  { %v128_v1 = vmul.f32 %v163_v47, %v121_v0 }
 0x131   :  { %v130_v2 = vmul.f32 %v128_v1, %v292_v11 }
 0x133   :  { %v135_v3 = vadd.f32 %v164_v55, %v130_v2 }
 0x135   :  { %137 = vst.msk [vmem:[#allocation7 + $0x8] sm:$0xff] %vm47_vm0, %v135_v3 }
 0x136   :  { %150 = dma.vmem_to_hbm [thread:$0]  %s143_s25, 256, %s145_s27, [#allocation4], %s252_s20, %s252_s20, %s253_s21  }
 0x137   :  { %249 = dma.done.wait [#allocation4], 256  }
 0x138   :  { %250 = vsyncadd [#allocation4], 4294967040 }
 0x139   :  { %155 = vsyncpa [#allocation3], 1 }
 0x13a   :  { %156 = vsyncpa [#allocation6], 1 }
 0x13b   :  { %157 = vsyncpa [#allocation4], 1 }

</bundles_post_ra>
